<compile_context>
chip_gen: v5e
topology: v5e:2x2
jax: 0.10.0
libtpu: 0.0.40
codegen_flags: <defaults>
</compile_context>

<pallas_src>
import jax
import jax.numpy as jnp
from jax.experimental import pallas as pl
from jax.experimental.pallas import tpu as pltpu

LANES = 128  # lane width of a vreg; the batch tile lives on this axis


def actor_kernel(obs_ref, w1_ref, b1_ref, w2_ref, b2_ref, w3_ref, b3_ref,
                 mean_ref):
    # Batch-on-lanes: every ref carries the batch tile on the last (lane) axis,
    # so the VPU bias adds, EUP tanh and the output store are lane-dense.
    cdt = w1_ref.dtype  # MXU input dtype (f32, or bf16 on v6e/v7x)
    x = obs_ref[...]                                               # [obs_dim, TB]
    # Layer 1: Linear + Tanh  (f32 accumulation, f32 bias add / tanh)
    h = jnp.dot(w1_ref[...], x, preferred_element_type=jnp.float32)
    h = jnp.tanh(h + b1_ref[...])                                  # [h1, TB]
    # Layer 2: Linear + Tanh
    h = jnp.dot(w2_ref[...], h.astype(cdt), preferred_element_type=jnp.float32)
    h = jnp.tanh(h + b2_ref[...])                                  # [h2, TB]
    # Layer 3: Linear (Identity) -> mean of the Normal
    mean = jnp.dot(w3_ref[...], h.astype(cdt),
                   preferred_element_type=jnp.float32) + b3_ref[...]
    mean_ref[...] = mean.astype(mean_ref.dtype)                    # [act_dim, TB]


def _choose_batch_tile(B, max_tile, prefer_even_grid):
    """Balanced, padding-aware batch tile (batch lives on the 128-lane axis)."""
    n_blocks = pl.cdiv(B, LANES)                 # 128-wide lane blocks needed
    per_tile_cap = max(1, max_tile // LANES)
    n_steps = pl.cdiv(n_blocks, per_tile_cap)
    if prefer_even_grid and n_steps > 1 and n_steps % 2:
        n_steps += 1                             # v7x: 2 TCs share the batch grid
    per_tile = pl.cdiv(n_blocks, n_steps)        # balanced tile -> pad <= 127 rows
    TB = per_tile * LANES
    n_steps = pl.cdiv(n_blocks, per_tile)
    return TB, n_steps


def actor_forward(obs, params, *, max_tile=2048, prefer_even_grid=False,
                  compute_dtype=jnp.float32):
    """Actor forward pass with a batch-tiled, batch-on-lanes Pallas kernel.

    obs:     [B, obs_dim] float32
    params:  dict with w1,b1,w2,b2,w3,b3,log_std; weights in PyTorch [out, in]
             layout, biases as [out, 1] columns.
    returns: (mean [B, act_dim], std [B, act_dim])
    """
    B, obs_dim = obs.shape
    h1 = params["w1"].shape[0]
    h2 = params["w2"].shape[0]
    act_dim = params["w3"].shape[0]

    TB, n_steps = _choose_batch_tile(B, max_tile, prefer_even_grid)
    B_pad = TB * n_steps

    # Batch-on-lanes: stream obs as [obs_dim, TB] tiles (transpose + pad is a
    # tiny wrapper-side layout op; pad rows compute tanh(bias) and are sliced).
    obs_t = obs.T.astype(compute_dtype)
    if B_pad != B:
        obs_t = jnp.pad(obs_t, ((0, 0), (0, B_pad - B)))

    w1 = params["w1"].astype(compute_dtype)
    w2 = params["w2"].astype(compute_dtype)
    w3 = params["w3"].astype(compute_dtype)
    b1, b2, b3 = params["b1"], params["b2"], params["b3"]  # stay f32 (tiny)

    # Resident (constant index_map) specs: weights/biases stay in VMEM across
    # the batch grid.
    def resident(arr):
        return pl.BlockSpec(arr.shape, lambda i: (0,) * arr.ndim)

    itemsize = jnp.dtype(compute_dtype).itemsize
    cost = pl.CostEstimate(  # un-padded counts (pad waste is <= 127 rows)
        flops=2 * B * (obs_dim * h1 + h1 * h2 + h2 * act_dim),
        transcendentals=B * (h1 + h2),
        bytes_accessed=itemsize * (B * obs_dim + obs_dim * h1 + h1 * h2
                                   + h2 * act_dim)
        + 4 * (B * act_dim + h1 + h2 + act_dim),
    )

    mean_t = pl.pallas_call(
        actor_kernel,
        out_shape=jax.ShapeDtypeStruct((act_dim, B_pad), jnp.float32),
        grid=(n_steps,),
        in_specs=[
            pl.BlockSpec((obs_dim, TB), lambda i: (0, i)),  # obs streams per tile
            resident(w1), resident(b1),
            resident(w2), resident(b2),
            resident(w3), resident(b3),
        ],
        out_specs=pl.BlockSpec((act_dim, TB), lambda i: (0, i)),  # lane-dense store
        compiler_params=pltpu.CompilerParams(
            dimension_semantics=("parallel",),
        ),
        cost_estimate=cost,
    )(obs_t, w1, b1, w2, b2, w3, b3)

    mean = mean_t[:, :B].T  # [B, act_dim]
    # std is obs-independent: compute once outside the kernel, broadcast lazily.
    std = jnp.broadcast_to(jnp.exp(params["log_std"]), (B, act_dim))
    return mean, std


def init_actor_params(key, obs_dim, act_dim, hidden_sizes=(32, 32)):
    """Deterministic init mirroring the PyTorch module's parameter shapes.

    Weights stored in PyTorch nn.Linear [out, in] layout (the kernel computes
    W @ x with batch on lanes); biases stored as [out, 1] columns.
    bound = 1/sqrt(fan_in) matches nn.Linear's default uniform init range.
    log_std starts at zeros.
    """
    sizes = [obs_dim] + list(hidden_sizes) + [act_dim]
    params = {}
    for j in range(len(sizes) - 1):
        fan_in, fan_out = sizes[j], sizes[j + 1]
        key, kw, kb = jax.random.split(key, 3)
        bound = (1.0 / fan_in) ** 0.5
        params[f"w{j+1}"] = jax.random.uniform(
            kw, (fan_out, fan_in), jnp.float32, -bound, bound)
        params[f"b{j+1}"] = jax.random.uniform(
            kb, (fan_out, 1), jnp.float32, -bound, bound)
    params["log_std"] = jnp.zeros((1, act_dim), jnp.float32)
    return params


def actor_reference(obs, params):
    """Pure-JAX reference of the same forward pass (weights are [out, in])."""
    h = jnp.tanh(obs @ params["w1"].T + params["b1"].T)
    h = jnp.tanh(h @ params["w2"].T + params["b2"].T)
    mean = h @ params["w3"].T + params["b3"].T
    std = jnp.broadcast_to(jnp.exp(params["log_std"]), mean.shape)
    return mean, std


if __name__ == "__main__":
    obs_dim, act_dim = 10, 2
    hidden_sizes = (32, 32)

    key = jax.random.PRNGKey(0)
    key, k_obs = jax.random.split(key)
    params = init_actor_params(key, obs_dim, act_dim, hidden_sizes)

    # Small batch (single 128-lane padded tile).
    obs = jax.random.normal(k_obs, (2, obs_dim), jnp.float32)
    # TODO(synk): actions / log-probs require sampling from Normal(mean, std);
    # only the distribution parameters (mean, std) are produced here.
    mean, std = actor_forward(obs, params)
    jax.block_until_ready((mean, std))
    mean_ref, std_ref = actor_reference(obs, params)
    assert mean.shape == (2, act_dim) and std.shape == (2, act_dim)
    assert jnp.allclose(mean, mean_ref, atol=1e-5, rtol=1e-5)
    assert jnp.allclose(std, std_ref, atol=1e-6, rtol=1e-6)

    # Multi-tile batch (grid > 1, padded remainder tile, balanced 256-wide tiles).
    key, k_big = jax.random.split(key)
    obs_big = jax.random.normal(k_big, (1030, obs_dim), jnp.float32)
    mean_big, std_big = actor_forward(obs_big, params, max_tile=256)
    jax.block_until_ready((mean_big, std_big))
    mean_big_ref, std_big_ref = actor_reference(obs_big, params)
    assert jnp.allclose(mean_big, mean_big_ref, atol=1e-5, rtol=1e-5)
    assert jnp.allclose(std_big, std_big_ref, atol=1e-6, rtol=1e-6)

    # bf16 MXU-input path (v6e/v7x): f32 accumulation/tanh, loose tolerance.
    mean_bf16, _ = actor_forward(obs_big, params, compute_dtype=jnp.bfloat16)
    jax.block_until_ready(mean_bf16)
    assert jnp.allclose(mean_bf16, mean_big_ref, atol=5e-2, rtol=5e-2)

    print("KERNEL_OK")
</pallas_src>

<mosaic_0001>
module attributes {stable_mosaic.version = 11 : i64} {
  func.func @actor_kernel(%arg0: i32, %arg1: memref<10x128xf32, #tpu.memory_space<vmem>>, %arg2: memref<32x10xf32, #tpu.memory_space<vmem>>, %arg3: memref<32x1xf32, #tpu.memory_space<vmem>>, %arg4: memref<32x32xf32, #tpu.memory_space<vmem>>, %arg5: memref<32x1xf32, #tpu.memory_space<vmem>>, %arg6: memref<2x32xf32, #tpu.memory_space<vmem>>, %arg7: memref<2x1xf32, #tpu.memory_space<vmem>>, %arg8: memref<2x128xf32, #tpu.memory_space<vmem>>) attributes {dimension_semantics = [#tpu.dimension_semantics<parallel>], iteration_bounds = array<i64: 1>, scalar_prefetch = 0 : i64, scratch_operands = 0 : i64, tpu.core_type = #tpu.core_type<tc>, window_params = [{transform_indices = @transform_0, window_bounds = array<i64: 10, 128>}, {pipeline_mode = #tpu.pipeline_mode<synchronous>, transform_indices = @transform_1, window_bounds = array<i64: 32, 10>}, {pipeline_mode = #tpu.pipeline_mode<synchronous>, transform_indices = @transform_2, window_bounds = array<i64: 32, 1>}, {pipeline_mode = #tpu.pipeline_mode<synchronous>, transform_indices = @transform_3, window_bounds = array<i64: 32, 32>}, {pipeline_mode = #tpu.pipeline_mode<synchronous>, transform_indices = @transform_4, window_bounds = array<i64: 32, 1>}, {pipeline_mode = #tpu.pipeline_mode<synchronous>, transform_indices = @transform_5, window_bounds = array<i64: 2, 32>}, {pipeline_mode = #tpu.pipeline_mode<synchronous>, transform_indices = @transform_6, window_bounds = array<i64: 2, 1>}, {transform_indices = @transform_7, window_bounds = array<i64: 2, 128>}]} {
    %c0 = arith.constant 0 : index
    %c0_0 = arith.constant 0 : index
    %0 = vector.load %arg1[%c0, %c0_0] : memref<10x128xf32, #tpu.memory_space<vmem>>, vector<10x128xf32>
    %c0_1 = arith.constant 0 : index
    %c0_2 = arith.constant 0 : index
    %1 = vector.load %arg2[%c0_1, %c0_2] : memref<32x10xf32, #tpu.memory_space<vmem>>, vector<32x10xf32>
    %cst = arith.constant dense<0.000000e+00> : vector<32x128xf32>
    %2 = tpu.matmul %1, %0, %cst {dimension_numbers = #tpu.dot_dimension_numbers<[1], [0], [0], [1], [0, 0, 1, 1], [], []>} : vector<32x10xf32>, vector<10x128xf32>, vector<32x128xf32> -> vector<32x128xf32>
    %c0_3 = arith.constant 0 : index
    %c0_4 = arith.constant 0 : index
    %3 = vector.load %arg3[%c0_3, %c0_4] : memref<32x1xf32, #tpu.memory_space<vmem>>, vector<32x1xf32>
    %4 = vector.broadcast %3 : vector<32x1xf32> to vector<32x128xf32>
    %5 = arith.addf %2, %4 : vector<32x128xf32>
    %6 = math.tanh %5 : vector<32x128xf32>
    %c0_5 = arith.constant 0 : index
    %c0_6 = arith.constant 0 : index
    %7 = vector.load %arg4[%c0_5, %c0_6] : memref<32x32xf32, #tpu.memory_space<vmem>>, vector<32x32xf32>
    %cst_7 = arith.constant dense<0.000000e+00> : vector<32x128xf32>
    %8 = tpu.matmul %7, %6, %cst_7 {dimension_numbers = #tpu.dot_dimension_numbers<[1], [0], [0], [1], [0, 0, 1, 1], [], []>} : vector<32x32xf32>, vector<32x128xf32>, vector<32x128xf32> -> vector<32x128xf32>
    %c0_8 = arith.constant 0 : index
    %c0_9 = arith.constant 0 : index
    %9 = vector.load %arg5[%c0_8, %c0_9] : memref<32x1xf32, #tpu.memory_space<vmem>>, vector<32x1xf32>
    %10 = vector.broadcast %9 : vector<32x1xf32> to vector<32x128xf32>
    %11 = arith.addf %8, %10 : vector<32x128xf32>
    %12 = math.tanh %11 : vector<32x128xf32>
    %c0_10 = arith.constant 0 : index
    %c0_11 = arith.constant 0 : index
    %13 = vector.load %arg6[%c0_10, %c0_11] : memref<2x32xf32, #tpu.memory_space<vmem>>, vector<2x32xf32>
    %cst_12 = arith.constant dense<0.000000e+00> : vector<2x128xf32>
    %14 = tpu.matmul %13, %12, %cst_12 {dimension_numbers = #tpu.dot_dimension_numbers<[1], [0], [0], [1], [0, 0, 1, 1], [], []>} : vector<2x32xf32>, vector<32x128xf32>, vector<2x128xf32> -> vector<2x128xf32>
    %c0_13 = arith.constant 0 : index
    %c0_14 = arith.constant 0 : index
    %15 = vector.load %arg7[%c0_13, %c0_14] : memref<2x1xf32, #tpu.memory_space<vmem>>, vector<2x1xf32>
    %16 = vector.broadcast %15 : vector<2x1xf32> to vector<2x128xf32>
    %17 = arith.addf %14, %16 : vector<2x128xf32>
    %c0_15 = arith.constant 0 : index
    %c0_16 = arith.constant 0 : index
    %18 = vector.load %arg8[%c0_15, %c0_16] : memref<2x128xf32, #tpu.memory_space<vmem>>, vector<2x128xf32>
    tpu.vector_store %arg8[%c0_15, %c0_16], %17 {strides = array<i32>} : memref<2x128xf32, #tpu.memory_space<vmem>>, vector<2x128xf32>,
    return
  }
  func.func @transform_0(%arg0: i32) -> (i32, i32) {
    %c0_i32 = arith.constant 0 : i32
    %c0_i32_0 = arith.constant 0 : i32
    return %c0_i32, %arg0 : i32, i32
  }
  func.func @transform_1(%arg0: i32) -> (i32, i32) {
    %c0_i32 = arith.constant 0 : i32
    %c0_i32_0 = arith.constant 0 : i32
    %c0_i32_1 = arith.constant 0 : i32
    return %c0_i32, %c0_i32_0 : i32, i32
  }
  func.func @transform_2(%arg0: i32) -> (i32, i32) {
    %c0_i32 = arith.constant 0 : i32
    %c0_i32_0 = arith.constant 0 : i32
    %c0_i32_1 = arith.constant 0 : i32
    return %c0_i32, %c0_i32_0 : i32, i32
  }
  func.func @transform_3(%arg0: i32) -> (i32, i32) {
    %c0_i32 = arith.constant 0 : i32
    %c0_i32_0 = arith.constant 0 : i32
    %c0_i32_1 = arith.constant 0 : i32
    return %c0_i32, %c0_i32_0 : i32, i32
  }
  func.func @transform_4(%arg0: i32) -> (i32, i32) {
    %c0_i32 = arith.constant 0 : i32
    %c0_i32_0 = arith.constant 0 : i32
    %c0_i32_1 = arith.constant 0 : i32
    return %c0_i32, %c0_i32_0 : i32, i32
  }
  func.func @transform_5(%arg0: i32) -> (i32, i32) {
    %c0_i32 = arith.constant 0 : i32
    %c0_i32_0 = arith.constant 0 : i32
    %c0_i32_1 = arith.constant 0 : i32
    return %c0_i32, %c0_i32_0 : i32, i32
  }
  func.func @transform_6(%arg0: i32) -> (i32, i32) {
    %c0_i32 = arith.constant 0 : i32
    %c0_i32_0 = arith.constant 0 : i32
    %c0_i32_1 = arith.constant 0 : i32
    return %c0_i32, %c0_i32_0 : i32, i32
  }
  func.func @transform_7(%arg0: i32) -> (i32, i32) {
    %c0_i32 = arith.constant 0 : i32
    %c0_i32_0 = arith.constant 0 : i32
    return %c0_i32, %arg0 : i32, i32
  }
}

</mosaic_0001>

<bundles_post_ra>
// kernel: tpu_custom_call.1
= control target key start
LH: loop header
LB: loop body
LE: loop exit
PB: predicated region body
PF: predicated region fallthrough
CT: control target
= control target key end

     0   :  { %vm70_vm0 = vcmask 1041408   ;;  %vm57_vm1 = vcmask 80896   ;;  %v295_v5 = vmov 0   ;;  %s409_s0 = inlined_call_operand.vmem [shape: f32[10,128], index: 0, kind: input, shape index: {}]   ;;  %s410_s1 = inlined_call_operand.vmem [shape: f32[32,10], index: 1, kind: input, shape index: {}]   ;;  %s411_s2 = inlined_call_operand.vmem [shape: f32[32,1], index: 2, kind: input, shape index: {}]   ;;  %s412_s3 = inlined_call_operand.vmem [shape: f32[32,32], index: 3, kind: input, shape index: {}]   ;;  %s413_s4 = inlined_call_operand.vmem [shape: f32[32,1], index: 4, kind: input, shape index: {}]   ;;  %s414_s5 = inlined_call_operand.vmem [shape: f32[2,32], index: 5, kind: input, shape index: {}]   ;;  %s415_s6 = inlined_call_operand.vmem [shape: f32[2,1], index: 6, kind: input, shape index: {}]   ;;  %s416_s7 = inlined_call_operand.hbm [shape: f32[2,128], index: 7, kind: output, shape index: {}]  }
   0x1   :  { %v28_v0 = vld [vmem:[%s409_s0 + $0x8] sm:$0x3]  ;;  %v27_v1 = vld [vmem:[%s409_s0] sm:$0xff]  ;;  %v36_v3 = vld [vmem:[%s411_s2 + $0x18] sm:$0xff]  ;;  %251 = vset.pattern.permute.xlu1 %v295_v5  ;;  %250 = vset.pattern.permute.xlu0 %v295_v5 }
   0x2   :  { %228 = vmatpush.msk.msra.mxu0 %vm70_vm0, %v28_v0  ;;  %v29_v2 = vld [vmem:[%s410_s1] sm:$0xff]  ;;  %v34_v4 = vld [vmem:[%s411_s2 + $0x8] sm:$0xff]  ;;  %238 = vmatpush.msk.msra.mxu1 %vm70_vm0, %v28_v0  ;;  %v32_v6 = vld [vmem:[%s410_s1 + $0x18] sm:$0xff] }
   0x3   :  { %54 = vperm.xlu0 %250, %v36_v3   ;;  %44 = vperm.xlu1 %251, %v34_v4  }
   0x4   :  { %89 = vmatpush.msra.mxu0 %v27_v1 }
   0x5   :  { %229 = vmatmul.msk.f32.vlgmr.msra.gmra.mxu0 %vm57_vm1, %v29_v2 }
   0x6   :  { %12 = vsyncpa [#allocation3], 0  ;;  %239 = vmatpush.msra.mxu1 %v27_v1  ;;  %252 = vset.pattern.permute.xlu2 %v295_v5  ;;  %v35_v7 = vld [vmem:[%s411_s2 + $0x10] sm:$0xff]  ;;  %v30_v8 = vld [vmem:[%s410_s1 + $0x8] sm:$0xff]  ;;  %vm135_vm2 = vcmask 261120   ;;  %s296_s11 = smov [#allocation2]  }
   0x7   :  { %232 = vmatmul.msk.f32.vlgmr.msra.gmra.mxu1 %vm57_vm1, %v32_v6  ;;  %v33_v9 = vld [vmem:[%s411_s2] sm:$0xff]  ;;  %v112_v10 = vld [vmem:[%s413_s4 + $0x8] sm:$0xff]  ;;  %v31_v11 = vld [vmem:[%s410_s1 + $0x10] sm:$0xff]  ;;  %s217_s12 = sshll.u32 %s296_s11, 4  ;;  %s219_s15 = sshll.u32 %s416_s7, 4  ;;  %s218_s12 = int_to_ptr.vmem [resolvable:$true] %s217_s12  ;;  %s220_s15 = int_to_ptr.hbm [resolvable:$true] %s219_s15 }
   0x8   :  { %v111_v12 = vld [vmem:[%s413_s4] sm:$0xff]  ;;  %v114_v19 = vld [vmem:[%s413_s4 + $0x18] sm:$0xff]  ;;  %v113_v21 = vld [vmem:[%s413_s4 + $0x10] sm:$0xff] }
   0x9   :  { %132 = vperm.xlu2 %252, %v114_v19   ;;  %v182_v28 = vld [vmem:[%s415_s6] sm:$0x3]  ;;  %v108_v33 = vld [vmem:[%s412_s3 + $0x8] sm:$0xff]  ;;  %v109_v34 = vld [vmem:[%s412_s3 + $0x10] sm:$0xff] }
   0xa   :  { %v107_v31 = vld [vmem:[%s412_s3] sm:$0xff]  ;;  %v110_v35 = vld [vmem:[%s412_s3 + $0x18] sm:$0xff] }
   0xb   :  { %49 = vperm.xlu0 %250, %v35_v7   ;;  %39 = vperm.xlu1 %251, %v33_v9   ;;  %v181_v51 = vld [vmem:[%s414_s5] sm:$0x3] }
   0xd   :  { %230 = vmatmul.msk.f32.gmra.mxu0 %vm57_vm1, %v30_v8 }
  0x11   :  { %127 = vperm.xlu2 %252, %v113_v21  }
  0x13   :  { %122 = vperm.xlu0 %250, %v112_v10   ;;  %117 = vperm.xlu1 %251, %v111_v12  }
  0x15   :  { %231 = vmatmul.msk.f32.gmra.mxu0 %vm57_vm1, %v31_v11 }
  0x19   :  { %185 = vperm.xlu2 %252, %v182_v28  }
  0x63   :  { %v133_v36 = vpop.permute.xlu2 %132 }
  0x6b   :  { %v128_v38 = vpop.permute.xlu2 %127 }
  0x73   :  { %v186_v53 = vpop.permute.xlu2 %185 }
  0x75   :  { %v55_v14 = vpop.permute.xlu0 %54  ;;  %v45_v17 = vpop.permute.xlu1 %44 }
  0x7d   :  { %v50_v22 = vpop.permute.xlu0 %49  ;;  %v40_v23 = vpop.permute.xlu1 %39 }
  0x82   :  { %v91_v13 = vpop.f32.mrf.mxu0 }
  0x83   :  { %v92_v27 = vadd.f32 %v91_v13, %v40_v23 }
  0x84   :  { %v100_v15 = vpop.f32.mrf.mxu1 }
  0x85   :  { %v101_v16 = vadd.f32 %v100_v15, %v55_v14  ;;  %v123_v43 = vpop.permute.xlu0 %122  ;;  %v118_v46 = vpop.permute.xlu1 %117 }
  0x87   :  { %253 = vtanh.f32 %v101_v16 }
  0x8a   :  { %v94_v18 = vpop.f32.mrf.mxu0 }
  0x8b   :  { %v95_v25 = vadd.f32 %v94_v18, %v45_v17 }
  0x8d   :  { %v254_v20 = vpop.eup %253 }
  0x8e   :  { %160 = vmatpush.msrb.mxu1 %v254_v20  ;;  %240 = vmatpush.msra.mxu2 %v254_v20 }
  0x8f   :  { %241 = vmatpush.msra.mxu3 %v254_v20 }
  0x92   :  { %v97_v24 = vpop.f32.mrf.mxu0 }
  0x93   :  { %v98_v26 = vadd.f32 %v97_v24, %v50_v22 }
  0x95   :  { %255 = vtanh.f32 %v98_v26 }
  0x96   :  { %257 = vtanh.f32 %v95_v25 }
  0x97   :  { %259 = vtanh.f32 %v92_v27 }
  0x9b   :  { %v256_v29 = vpop.eup %255 }
  0x9c   :  { %161 = vmatpush.msrb.mxu1 %v256_v29  ;;  %242 = vmatpush.msra.mxu2 %v256_v29  ;;  %v258_v30 = vpop.eup %257 }
  0x9d   :  { %243 = vmatpush.msra.mxu3 %v256_v29  ;;  %v260_v32 = vpop.eup %259 }
  0x9e   :  { %162 = vmatpush.msrb.mxu1 %v258_v30  ;;  %244 = vmatpush.msra.mxu2 %v258_v30 }
  0x9f   :  { %245 = vmatpush.msra.mxu3 %v258_v30 }
  0xa0   :  { %163 = vmatpush.msrb.mxu1 %v260_v32  ;;  %246 = vmatpush.msra.mxu2 %v260_v32 }
  0xa1   :  { %247 = vmatpush.msra.mxu3 %v260_v32  ;;  %233 = vmatmul.msk.f32.vlgmr.msrb.gmra.mxu1 %vm135_vm2, %v107_v31 }
  0xa2   :  { %234 = vmatmul.msk.f32.vlgmr.msra.gmra.mxu2 %vm135_vm2, %v108_v33  ;;  %235 = vmatmul.msk.f32.vlgmr.msra.gmra.mxu3 %vm135_vm2, %v109_v34 }
  0xaa   :  { %236 = vmatmul.msk.f32.gmra.mxu3 %vm135_vm2, %v110_v35 }
 0x11e   :  { %v165_v44 = vpop.f32.mrf.mxu1 }
 0x11f   :  { %v166_v47 = vadd.f32 %v165_v44, %v118_v46 }
 0x125   :  { %v171_v37 = vpop.f32.mrf.mxu3  ;;  %v168_v39 = vpop.f32.mrf.mxu2 }
 0x126   :  { %v172_v41 = vadd.f32 %v171_v37, %v128_v38  ;;  %v169_v45 = vadd.f32 %v168_v39, %v123_v43 }
 0x12d   :  { %v174_v40 = vpop.f32.mrf.mxu3 }
 0x12e   :  { %v175_v42 = vadd.f32 %v174_v40, %v133_v36 }
 0x130   :  { %261 = vtanh.f32 %v175_v42 }
 0x131   :  { %263 = vtanh.f32 %v172_v41 }
 0x132   :  { %265 = vtanh.f32 %v169_v45 }
 0x133   :  { %267 = vtanh.f32 %v166_v47 }
 0x136   :  { %v262_v48 = vpop.eup %261 }
 0x137   :  { %203 = vmatpush.msrb.mxu2 %v262_v48  ;;  %v264_v49 = vpop.eup %263 }
 0x138   :  { %v266_v50 = vpop.eup %265 }
 0x139   :  { %204 = vmatpush.msrb.mxu2 %v264_v49  ;;  %v268_v52 = vpop.eup %267 }
 0x13b   :  { %205 = vmatpush.msrb.mxu2 %v266_v50 }
 0x13d   :  { %206 = vmatpush.msrb.mxu2 %v268_v52 }
 0x13e   :  { %237 = vmatmul.msk.f32.vlgmr.msrb.gmra.mxu2 %vm135_vm2, %v181_v51 }
 0x1c1   :  { %v208_v54 = vpop.f32.mrf.mxu2 }
 0x1c2   :  { %v209_v55 = vadd.f32 %v208_v54, %v186_v53 }
 0x1c4   :  { %211 = vst [vmem:[#allocation2] sm:$0x3] %v209_v55 }
 0x1c5   :  { %222 = dma.vmem_to_hbm [thread:$0]  %s218_s12, 32, %s220_s15, [#allocation3]  }
 0x1c6   :  { %293 = dma.done.wait [#allocation3], 32  }
 0x1c7   :  { %294 = vsyncadd [#allocation3], 4294967264 }
 0x1c8   :  { %227 = vsyncpa [#allocation3], 1 }

</bundles_post_ra>
